<compile_context>
chip_gen: v7x
topology: tpu7x:2x2x1
jax: 0.10.0
libtpu: 0.0.40
codegen_flags: <defaults>
</compile_context>

<pallas_src>
import jax
import jax.numpy as jnp
from jax.experimental import pallas as pl
from jax.experimental.pallas import tpu as pltpu


def _pick_batch_tile(B, Cin, Cout, HW, Kp, itemsize, budget_bytes=8 << 20):
    """Largest divisor of B whose double-buffered blocks + scratch fit the budget."""
    best = 1
    for bt in range(1, B + 1):
        if B % bt:
            continue
        need = 2 * bt * (Cin + Cout) * HW * itemsize + Kp * HW * itemsize
        if need <= budget_bytes:
            best = bt
    return best


def basic_block_sig(x_nchw, weight, bias):
    """x_nchw: (B, Cin, H, W); weight: (Cout, Cin, 3, 3) (PyTorch OIHW); bias: (Cout,)."""
    B, Cin, H, W = x_nchw.shape
    Cout = weight.shape[0]
    HW = H * W
    Kp = 9 * Cin + 1  # 9 taps * Cin  +  one ones-row that carries the bias

    dtype = x_nchw.dtype
    itemsize = jnp.dtype(dtype).itemsize
    Bt = _pick_batch_tile(B, Cin, Cout, HW, Kp, itemsize)

    # Free reshape only — no HBM-sweeping transpose/pad of the activation.
    x_flat = x_nchw.reshape(B, Cin, HW)

    # Weight prep is tiny.  Column order (dy, dx, ci) must match the row order
    # the kernel writes taps into the stacked im2col scratch; last column = bias.
    w9 = jnp.transpose(weight, (0, 2, 3, 1)).reshape(Cout, 9 * Cin)
    wf = jnp.concatenate([w9, bias.reshape(Cout, 1)], axis=1)

    # Column index of every flattened spatial position (host-precomputed).
    col_idx = jnp.tile(jnp.arange(W, dtype=jnp.int32), H).reshape(1, HW)

    def kernel(x_ref, w_ref, col_ref, o_ref, stk_ref):
        # x_ref: (Bt, Cin, HW)   w_ref: (Cout, Kp)   col_ref: (1, HW)
        # o_ref: (Bt, Cout, HW)  stk_ref (scratch): (Kp, HW)
        col = col_ref[...]
        # Hoisted border masks (source column c-1 / c+1 must exist).
        valid_l = col >= 1
        valid_r = col < (W - 1)

        # Bias row of the fused matmul (ones * bias column of wf).
        stk_ref[pl.ds(9 * Cin, 1), :] = jnp.ones((1, HW), stk_ref.dtype)

        wf_v = w_ref[...]  # native dtype; accumulation is forced to f32 below

        def shift_flat(v, s):
            # y[:, p] = v[:, p + s] if 0 <= p + s < HW else 0   (static s)
            if s == 0:
                return v
            n = v.shape[-1]
            z = jnp.zeros(v.shape[:-1] + (abs(s),), v.dtype)
            if s > 0:
                return jnp.concatenate([v[..., s:], z], axis=-1)
            return jnp.concatenate([z, v[..., : n + s]], axis=-1)

        for b in range(Bt):  # static unroll over the batch sub-block
            x = x_ref[b]  # (Cin, HW), native dtype (no upcast)
            t = 0
            for dy in range(3):
                for dx in range(3):
                    oy, ox = dy - 1, dx - 1
                    xs = shift_flat(x, oy * W + ox)
                    # Top/bottom zero padding falls out of the zero-filled flat
                    # shift; only left/right columns need masking.
                    if ox == -1:
                        xs = jnp.where(valid_l, xs, 0)
                    elif ox == 1:
                        xs = jnp.where(valid_r, xs, 0)
                    stk_ref[pl.ds(t * Cin, Cin), :] = xs
                    t += 1

            # Single fused MXU matmul: (Cout, 9*Cin+1) @ (9*Cin+1, HW), f32 acc.
            acc = jnp.dot(wf_v, stk_ref[...], preferred_element_type=jnp.float32)
            o_ref[b] = jax.nn.sigmoid(acc).astype(o_ref.dtype)

    out_flat = pl.pallas_call(
        kernel,
        out_shape=jax.ShapeDtypeStruct((B, Cout, HW), dtype),
        grid_spec=pltpu.PrefetchScalarGridSpec(
            num_scalar_prefetch=0,
            grid=(B // Bt,),
            in_specs=[
                pl.BlockSpec((Bt, Cin, HW), lambda i: (i, 0, 0)),
                pl.BlockSpec((Cout, Kp), lambda i: (0, 0)),
                pl.BlockSpec((1, HW), lambda i: (0, 0)),
            ],
            out_specs=pl.BlockSpec((Bt, Cout, HW), lambda i: (i, 0, 0)),
            scratch_shapes=[pltpu.VMEM((Kp, HW), dtype)],
        ),
        compiler_params=pltpu.CompilerParams(
            dimension_semantics=("parallel",),
            vmem_limit_bytes=64 * 1024 * 1024,
        ),
    )(x_flat, wf, col_idx)

    # Free reshape back to NCHW.
    return out_flat.reshape(B, Cout, H, W)


def basic_block_sig_ref(x, weight, bias):
    """Pure-JAX reference matching the PyTorch forward (NCHW, OIHW)."""
    out = jax.lax.conv_general_dilated(
        x, weight, window_strides=(1, 1), padding=((1, 1), (1, 1)),
        dimension_numbers=("NCHW", "OIHW", "NCHW"),
        precision=jax.lax.Precision.HIGHEST)
    return jax.nn.sigmoid(out + bias[None, :, None, None])


if __name__ == "__main__":
    B, Cin, Cout, H, W = 2, 4, 8, 16, 16

    key = jax.random.PRNGKey(0)
    kx, kw, kb = jax.random.split(key, 3)

    x = jax.random.normal(kx, (B, Cin, H, W), dtype=jnp.float32)
    weight = jax.random.normal(kw, (Cout, Cin, 3, 3), dtype=jnp.float32) * 0.1
    bias = jax.random.normal(kb, (Cout,), dtype=jnp.float32) * 0.1

    out = basic_block_sig(x, weight, bias)
    out = jax.block_until_ready(out)

    ref = basic_block_sig_ref(x, weight, bias)
    assert out.shape == (B, Cout, H, W)
    assert jnp.allclose(out, ref, atol=1e-4, rtol=1e-4), "mismatch vs reference"

    print("KERNEL_OK")
</pallas_src>

<mosaic_0001>
module attributes {stable_mosaic.version = 11 : i64} {
  func.func @kernel(%arg0: i32, %arg1: memref<2x4x256xf32, #tpu.memory_space<vmem>>, %arg2: memref<8x37xf32, #tpu.memory_space<vmem>>, %arg3: memref<1x256xi32, #tpu.memory_space<vmem>>, %arg4: memref<2x8x256xf32, #tpu.memory_space<vmem>>, %arg5: memref<37x256xf32, #tpu.memory_space<vmem>>) attributes {dimension_semantics = [#tpu.dimension_semantics<parallel>], iteration_bounds = array<i64: 1>, scalar_prefetch = 0 : i64, scratch_operands = 1 : i64, tpu.core_type = #tpu.core_type<tc>, window_params = [{transform_indices = @transform_0, window_bounds = array<i64: 2, 4, 256>}, {pipeline_mode = #tpu.pipeline_mode<synchronous>, transform_indices = @transform_1, window_bounds = array<i64: 8, 37>}, {pipeline_mode = #tpu.pipeline_mode<synchronous>, transform_indices = @transform_2, window_bounds = array<i64: 1, 256>}, {transform_indices = @transform_3, window_bounds = array<i64: 2, 8, 256>}]} {
    %c0 = arith.constant 0 : index
    %c0_0 = arith.constant 0 : index
    %0 = vector.load %arg3[%c0, %c0_0] : memref<1x256xi32, #tpu.memory_space<vmem>>, vector<1x256xi32>
    %c1_i32 = arith.constant 1 : i32
    %1 = vector.broadcast %c1_i32 : i32 to vector<1x256xi32>
    %2 = arith.cmpi sge, %0, %1 : vector<1x256xi32>
    %c15_i32 = arith.constant 15 : i32
    %3 = vector.broadcast %c15_i32 : i32 to vector<1x256xi32>
    %4 = arith.cmpi slt, %0, %3 : vector<1x256xi32>
    %cst = arith.constant 1.000000e+00 : f32
    %5 = vector.broadcast %cst : f32 to vector<1x256xf32>
    %c36 = arith.constant 36 : index
    %c0_1 = arith.constant 0 : index
    %6 = vector.load %arg5[%c36, %c0_1] : memref<37x256xf32, #tpu.memory_space<vmem>>, vector<1x256xf32>
    tpu.vector_store %arg5[%c36, %c0_1], %5 {strides = array<i32>} : memref<37x256xf32, #tpu.memory_space<vmem>>, vector<1x256xf32>,
    %c0_2 = arith.constant 0 : index
    %c0_3 = arith.constant 0 : index
    %7 = vector.load %arg2[%c0_2, %c0_3] : memref<8x37xf32, #tpu.memory_space<vmem>>, vector<8x37xf32>
    %c0_4 = arith.constant 0 : index
    %c0_5 = arith.constant 0 : index
    %c0_6 = arith.constant 0 : index
    %8 = vector.load %arg1[%c0_4, %c0_5, %c0_6] : memref<2x4x256xf32, #tpu.memory_space<vmem>>, vector<1x4x256xf32>
    %9 = vector.shape_cast %8 : vector<1x4x256xf32> to vector<4x256xf32>
    %cst_7 = arith.constant 0.000000e+00 : f32
    %10 = vector.broadcast %cst_7 : f32 to vector<4x17xf32>
    %11 = vector.extract_strided_slice %9 {offsets = [0, 0], sizes = [4, 239], strides = [1, 1]} : vector<4x256xf32> to vector<4x239xf32>
    %12 = tpu.concatenate %10, %11 in 1 : vector<4x17xf32>, vector<4x239xf32> -> vector<4x256xf32>
    %c0_i32 = arith.constant 0 : i32
    %13 = arith.sitofp %c0_i32 : i32 to f32
    %14 = vector.shape_cast %2 : vector<1x256xi1> to vector<1x256xi1>
    %15 = vector.broadcast %14 : vector<1x256xi1> to vector<4x256xi1>
    %16 = vector.broadcast %13 : f32 to vector<4x256xf32>
    %17 = arith.select %15, %12, %16 : vector<4x256xi1>, vector<4x256xf32>
    %c0_8 = arith.constant 0 : index
    %c0_9 = arith.constant 0 : index
    %18 = vector.load %arg5[%c0_8, %c0_9] : memref<37x256xf32, #tpu.memory_space<vmem>>, vector<4x256xf32>
    tpu.vector_store %arg5[%c0_8, %c0_9], %17 {strides = array<i32>} : memref<37x256xf32, #tpu.memory_space<vmem>>, vector<4x256xf32>,
    %cst_10 = arith.constant 0.000000e+00 : f32
    %19 = vector.broadcast %cst_10 : f32 to vector<4x16xf32>
    %20 = vector.extract_strided_slice %9 {offsets = [0, 0], sizes = [4, 240], strides = [1, 1]} : vector<4x256xf32> to vector<4x240xf32>
    %21 = tpu.concatenate %19, %20 in 1 : vector<4x16xf32>, vector<4x240xf32> -> vector<4x256xf32>
    %c4 = arith.constant 4 : index
    %c0_11 = arith.constant 0 : index
    %22 = vector.load %arg5[%c4, %c0_11] : memref<37x256xf32, #tpu.memory_space<vmem>>, vector<4x256xf32>
    tpu.vector_store %arg5[%c4, %c0_11], %21 {strides = array<i32>} : memref<37x256xf32, #tpu.memory_space<vmem>>, vector<4x256xf32>,
    %cst_12 = arith.constant 0.000000e+00 : f32
    %23 = vector.broadcast %cst_12 : f32 to vector<4x15xf32>
    %24 = vector.extract_strided_slice %9 {offsets = [0, 0], sizes = [4, 241], strides = [1, 1]} : vector<4x256xf32> to vector<4x241xf32>
    %25 = tpu.concatenate %23, %24 in 1 : vector<4x15xf32>, vector<4x241xf32> -> vector<4x256xf32>
    %c0_i32_13 = arith.constant 0 : i32
    %26 = arith.sitofp %c0_i32_13 : i32 to f32
    %27 = vector.shape_cast %4 : vector<1x256xi1> to vector<1x256xi1>
    %28 = vector.broadcast %27 : vector<1x256xi1> to vector<4x256xi1>
    %29 = vector.broadcast %26 : f32 to vector<4x256xf32>
    %30 = arith.select %28, %25, %29 : vector<4x256xi1>, vector<4x256xf32>
    %c8 = arith.constant 8 : index
    %c0_14 = arith.constant 0 : index
    %31 = vector.load %arg5[%c8, %c0_14] : memref<37x256xf32, #tpu.memory_space<vmem>>, vector<4x256xf32>
    tpu.vector_store %arg5[%c8, %c0_14], %30 {strides = array<i32>} : memref<37x256xf32, #tpu.memory_space<vmem>>, vector<4x256xf32>,
    %cst_15 = arith.constant 0.000000e+00 : f32
    %32 = vector.broadcast %cst_15 : f32 to vector<4x1xf32>
    %33 = vector.extract_strided_slice %9 {offsets = [0, 0], sizes = [4, 255], strides = [1, 1]} : vector<4x256xf32> to vector<4x255xf32>
    %34 = tpu.concatenate %32, %33 in 1 : vector<4x1xf32>, vector<4x255xf32> -> vector<4x256xf32>
    %c0_i32_16 = arith.constant 0 : i32
    %35 = arith.sitofp %c0_i32_16 : i32 to f32
    %36 = vector.shape_cast %2 : vector<1x256xi1> to vector<1x256xi1>
    %37 = vector.broadcast %36 : vector<1x256xi1> to vector<4x256xi1>
    %38 = vector.broadcast %35 : f32 to vector<4x256xf32>
    %39 = arith.select %37, %34, %38 : vector<4x256xi1>, vector<4x256xf32>
    %c12 = arith.constant 12 : index
    %c0_17 = arith.constant 0 : index
    %40 = vector.load %arg5[%c12, %c0_17] : memref<37x256xf32, #tpu.memory_space<vmem>>, vector<4x256xf32>
    tpu.vector_store %arg5[%c12, %c0_17], %39 {strides = array<i32>} : memref<37x256xf32, #tpu.memory_space<vmem>>, vector<4x256xf32>,
    %c16 = arith.constant 16 : index
    %c0_18 = arith.constant 0 : index
    %41 = vector.load %arg5[%c16, %c0_18] : memref<37x256xf32, #tpu.memory_space<vmem>>, vector<4x256xf32>
    tpu.vector_store %arg5[%c16, %c0_18], %9 {strides = array<i32>} : memref<37x256xf32, #tpu.memory_space<vmem>>, vector<4x256xf32>,
    %cst_19 = arith.constant 0.000000e+00 : f32
    %42 = vector.broadcast %cst_19 : f32 to vector<4x1xf32>
    %43 = vector.extract_strided_slice %9 {offsets = [0, 1], sizes = [4, 255], strides = [1, 1]} : vector<4x256xf32> to vector<4x255xf32>
    %44 = tpu.concatenate %43, %42 in 1 : vector<4x255xf32>, vector<4x1xf32> -> vector<4x256xf32>
    %c0_i32_20 = arith.constant 0 : i32
    %45 = arith.sitofp %c0_i32_20 : i32 to f32
    %46 = vector.shape_cast %4 : vector<1x256xi1> to vector<1x256xi1>
    %47 = vector.broadcast %46 : vector<1x256xi1> to vector<4x256xi1>
    %48 = vector.broadcast %45 : f32 to vector<4x256xf32>
    %49 = arith.select %47, %44, %48 : vector<4x256xi1>, vector<4x256xf32>
    %c20 = arith.constant 20 : index
    %c0_21 = arith.constant 0 : index
    %50 = vector.load %arg5[%c20, %c0_21] : memref<37x256xf32, #tpu.memory_space<vmem>>, vector<4x256xf32>
    tpu.vector_store %arg5[%c20, %c0_21], %49 {strides = array<i32>} : memref<37x256xf32, #tpu.memory_space<vmem>>, vector<4x256xf32>,
    %cst_22 = arith.constant 0.000000e+00 : f32
    %51 = vector.broadcast %cst_22 : f32 to vector<4x15xf32>
    %52 = vector.extract_strided_slice %9 {offsets = [0, 15], sizes = [4, 241], strides = [1, 1]} : vector<4x256xf32> to vector<4x241xf32>
    %53 = tpu.concatenate %52, %51 in 1 : vector<4x241xf32>, vector<4x15xf32> -> vector<4x256xf32>
    %c0_i32_23 = arith.constant 0 : i32
    %54 = arith.sitofp %c0_i32_23 : i32 to f32
    %55 = vector.shape_cast %2 : vector<1x256xi1> to vector<1x256xi1>
    %56 = vector.broadcast %55 : vector<1x256xi1> to vector<4x256xi1>
    %57 = vector.broadcast %54 : f32 to vector<4x256xf32>
    %58 = arith.select %56, %53, %57 : vector<4x256xi1>, vector<4x256xf32>
    %c24 = arith.constant 24 : index
    %c0_24 = arith.constant 0 : index
    %59 = vector.load %arg5[%c24, %c0_24] : memref<37x256xf32, #tpu.memory_space<vmem>>, vector<4x256xf32>
    tpu.vector_store %arg5[%c24, %c0_24], %58 {strides = array<i32>} : memref<37x256xf32, #tpu.memory_space<vmem>>, vector<4x256xf32>,
    %cst_25 = arith.constant 0.000000e+00 : f32
    %60 = vector.broadcast %cst_25 : f32 to vector<4x16xf32>
    %61 = vector.extract_strided_slice %9 {offsets = [0, 16], sizes = [4, 240], strides = [1, 1]} : vector<4x256xf32> to vector<4x240xf32>
    %62 = tpu.concatenate %61, %60 in 1 : vector<4x240xf32>, vector<4x16xf32> -> vector<4x256xf32>
    %c28 = arith.constant 28 : index
    %c0_26 = arith.constant 0 : index
    %63 = vector.load %arg5[%c28, %c0_26] : memref<37x256xf32, #tpu.memory_space<vmem>>, vector<4x256xf32>
    tpu.vector_store %arg5[%c28, %c0_26], %62 {strides = array<i32>} : memref<37x256xf32, #tpu.memory_space<vmem>>, vector<4x256xf32>,
    %cst_27 = arith.constant 0.000000e+00 : f32
    %64 = vector.broadcast %cst_27 : f32 to vector<4x17xf32>
    %65 = vector.extract_strided_slice %9 {offsets = [0, 17], sizes = [4, 239], strides = [1, 1]} : vector<4x256xf32> to vector<4x239xf32>
    %66 = tpu.concatenate %65, %64 in 1 : vector<4x239xf32>, vector<4x17xf32> -> vector<4x256xf32>
    %c0_i32_28 = arith.constant 0 : i32
    %67 = arith.sitofp %c0_i32_28 : i32 to f32
    %68 = vector.shape_cast %4 : vector<1x256xi1> to vector<1x256xi1>
    %69 = vector.broadcast %68 : vector<1x256xi1> to vector<4x256xi1>
    %70 = vector.broadcast %67 : f32 to vector<4x256xf32>
    %71 = arith.select %69, %66, %70 : vector<4x256xi1>, vector<4x256xf32>
    %c32 = arith.constant 32 : index
    %c0_29 = arith.constant 0 : index
    %72 = vector.load %arg5[%c32, %c0_29] : memref<37x256xf32, #tpu.memory_space<vmem>>, vector<4x256xf32>
    tpu.vector_store %arg5[%c32, %c0_29], %71 {strides = array<i32>} : memref<37x256xf32, #tpu.memory_space<vmem>>, vector<4x256xf32>,
    %c0_30 = arith.constant 0 : index
    %c0_31 = arith.constant 0 : index
    %73 = vector.load %arg5[%c0_30, %c0_31] : memref<37x256xf32, #tpu.memory_space<vmem>>, vector<37x256xf32>
    %cst_32 = arith.constant dense<0.000000e+00> : vector<8x256xf32>
    %74 = tpu.matmul %7, %73, %cst_32 {dimension_numbers = #tpu.dot_dimension_numbers<[1], [0], [0], [1], [0, 0, 1, 1], [], []>} : vector<8x37xf32>, vector<37x256xf32>, vector<8x256xf32> -> vector<8x256xf32>
    %75 = arith.negf %74 : vector<8x256xf32>
    %76 = math.exp %75 : vector<8x256xf32>
    %cst_33 = arith.constant 1.000000e+00 : f32
    %77 = vector.broadcast %cst_33 : f32 to vector<8x256xf32>
    %78 = arith.addf %77, %76 : vector<8x256xf32>
    %79 = arith.divf %77, %78 : vector<8x256xf32>
    %c0_34 = arith.constant 0 : index
    %c0_35 = arith.constant 0 : index
    %c0_36 = arith.constant 0 : index
    %80 = vector.load %arg4[%c0_34, %c0_35, %c0_36] : memref<2x8x256xf32, #tpu.memory_space<vmem>>, vector<1x8x256xf32>
    %81 = vector.shape_cast %80 : vector<1x8x256xf32> to vector<8x256xf32>
    %82 = vector.shape_cast %79 : vector<8x256xf32> to vector<1x8x256xf32>
    tpu.vector_store %arg4[%c0_34, %c0_35, %c0_36], %82 {strides = array<i32>} : memref<2x8x256xf32, #tpu.memory_space<vmem>>, vector<1x8x256xf32>,
    %c1 = arith.constant 1 : index
    %c0_37 = arith.constant 0 : index
    %c0_38 = arith.constant 0 : index
    %83 = vector.load %arg1[%c1, %c0_37, %c0_38] : memref<2x4x256xf32, #tpu.memory_space<vmem>>, vector<1x4x256xf32>
    %84 = vector.shape_cast %83 : vector<1x4x256xf32> to vector<4x256xf32>
    %cst_39 = arith.constant 0.000000e+00 : f32
    %85 = vector.broadcast %cst_39 : f32 to vector<4x17xf32>
    %86 = vector.extract_strided_slice %84 {offsets = [0, 0], sizes = [4, 239], strides = [1, 1]} : vector<4x256xf32> to vector<4x239xf32>
    %87 = tpu.concatenate %85, %86 in 1 : vector<4x17xf32>, vector<4x239xf32> -> vector<4x256xf32>
    %c0_i32_40 = arith.constant 0 : i32
    %88 = arith.sitofp %c0_i32_40 : i32 to f32
    %89 = vector.shape_cast %2 : vector<1x256xi1> to vector<1x256xi1>
    %90 = vector.broadcast %89 : vector<1x256xi1> to vector<4x256xi1>
    %91 = vector.broadcast %88 : f32 to vector<4x256xf32>
    %92 = arith.select %90, %87, %91 : vector<4x256xi1>, vector<4x256xf32>
    %c0_41 = arith.constant 0 : index
    %c0_42 = arith.constant 0 : index
    %93 = vector.load %arg5[%c0_41, %c0_42] : memref<37x256xf32, #tpu.memory_space<vmem>>, vector<4x256xf32>
    tpu.vector_store %arg5[%c0_41, %c0_42], %92 {strides = array<i32>} : memref<37x256xf32, #tpu.memory_space<vmem>>, vector<4x256xf32>,
    %cst_43 = arith.constant 0.000000e+00 : f32
    %94 = vector.broadcast %cst_43 : f32 to vector<4x16xf32>
    %95 = vector.extract_strided_slice %84 {offsets = [0, 0], sizes = [4, 240], strides = [1, 1]} : vector<4x256xf32> to vector<4x240xf32>
    %96 = tpu.concatenate %94, %95 in 1 : vector<4x16xf32>, vector<4x240xf32> -> vector<4x256xf32>
    %c4_44 = arith.constant 4 : index
    %c0_45 = arith.constant 0 : index
    %97 = vector.load %arg5[%c4_44, %c0_45] : memref<37x256xf32, #tpu.memory_space<vmem>>, vector<4x256xf32>
    tpu.vector_store %arg5[%c4_44, %c0_45], %96 {strides = array<i32>} : memref<37x256xf32, #tpu.memory_space<vmem>>, vector<4x256xf32>,
    %cst_46 = arith.constant 0.000000e+00 : f32
    %98 = vector.broadcast %cst_46 : f32 to vector<4x15xf32>
    %99 = vector.extract_strided_slice %84 {offsets = [0, 0], sizes = [4, 241], strides = [1, 1]} : vector<4x256xf32> to vector<4x241xf32>
    %100 = tpu.concatenate %98, %99 in 1 : vector<4x15xf32>, vector<4x241xf32> -> vector<4x256xf32>
    %c0_i32_47 = arith.constant 0 : i32
    %101 = arith.sitofp %c0_i32_47 : i32 to f32
    %102 = vector.shape_cast %4 : vector<1x256xi1> to vector<1x256xi1>
    %103 = vector.broadcast %102 : vector<1x256xi1> to vector<4x256xi1>
    %104 = vector.broadcast %101 : f32 to vector<4x256xf32>
    %105 = arith.select %103, %100, %104 : vector<4x256xi1>, vector<4x256xf32>
    %c8_48 = arith.constant 8 : index
    %c0_49 = arith.constant 0 : index
    %106 = vector.load %arg5[%c8_48, %c0_49] : memref<37x256xf32, #tpu.memory_space<vmem>>, vector<4x256xf32>
    tpu.vector_store %arg5[%c8_48, %c0_49], %105 {strides = array<i32>} : memref<37x256xf32, #tpu.memory_space<vmem>>, vector<4x256xf32>,
    %cst_50 = arith.constant 0.000000e+00 : f32
    %107 = vector.broadcast %cst_50 : f32 to vector<4x1xf32>
    %108 = vector.extract_strided_slice %84 {offsets = [0, 0], sizes = [4, 255], strides = [1, 1]} : vector<4x256xf32> to vector<4x255xf32>
    %109 = tpu.concatenate %107, %108 in 1 : vector<4x1xf32>, vector<4x255xf32> -> vector<4x256xf32>
    %c0_i32_51 = arith.constant 0 : i32
    %110 = arith.sitofp %c0_i32_51 : i32 to f32
    %111 = vector.shape_cast %2 : vector<1x256xi1> to vector<1x256xi1>
    %112 = vector.broadcast %111 : vector<1x256xi1> to vector<4x256xi1>
    %113 = vector.broadcast %110 : f32 to vector<4x256xf32>
    %114 = arith.select %112, %109, %113 : vector<4x256xi1>, vector<4x256xf32>
    %c12_52 = arith.constant 12 : index
    %c0_53 = arith.constant 0 : index
    %115 = vector.load %arg5[%c12_52, %c0_53] : memref<37x256xf32, #tpu.memory_space<vmem>>, vector<4x256xf32>
    tpu.vector_store %arg5[%c12_52, %c0_53], %114 {strides = array<i32>} : memref<37x256xf32, #tpu.memory_space<vmem>>, vector<4x256xf32>,
    %c16_54 = arith.constant 16 : index
    %c0_55 = arith.constant 0 : index
    %116 = vector.load %arg5[%c16_54, %c0_55] : memref<37x256xf32, #tpu.memory_space<vmem>>, vector<4x256xf32>
    tpu.vector_store %arg5[%c16_54, %c0_55], %84 {strides = array<i32>} : memref<37x256xf32, #tpu.memory_space<vmem>>, vector<4x256xf32>,
    %cst_56 = arith.constant 0.000000e+00 : f32
    %117 = vector.broadcast %cst_56 : f32 to vector<4x1xf32>
    %118 = vector.extract_strided_slice %84 {offsets = [0, 1], sizes = [4, 255], strides = [1, 1]} : vector<4x256xf32> to vector<4x255xf32>
    %119 = tpu.concatenate %118, %117 in 1 : vector<4x255xf32>, vector<4x1xf32> -> vector<4x256xf32>
    %c0_i32_57 = arith.constant 0 : i32
    %120 = arith.sitofp %c0_i32_57 : i32 to f32
    %121 = vector.shape_cast %4 : vector<1x256xi1> to vector<1x256xi1>
    %122 = vector.broadcast %121 : vector<1x256xi1> to vector<4x256xi1>
    %123 = vector.broadcast %120 : f32 to vector<4x256xf32>
    %124 = arith.select %122, %119, %123 : vector<4x256xi1>, vector<4x256xf32>
    %c20_58 = arith.constant 20 : index
    %c0_59 = arith.constant 0 : index
    %125 = vector.load %arg5[%c20_58, %c0_59] : memref<37x256xf32, #tpu.memory_space<vmem>>, vector<4x256xf32>
    tpu.vector_store %arg5[%c20_58, %c0_59], %124 {strides = array<i32>} : memref<37x256xf32, #tpu.memory_space<vmem>>, vector<4x256xf32>,
    %cst_60 = arith.constant 0.000000e+00 : f32
    %126 = vector.broadcast %cst_60 : f32 to vector<4x15xf32>
    %127 = vector.extract_strided_slice %84 {offsets = [0, 15], sizes = [4, 241], strides = [1, 1]} : vector<4x256xf32> to vector<4x241xf32>
    %128 = tpu.concatenate %127, %126 in 1 : vector<4x241xf32>, vector<4x15xf32> -> vector<4x256xf32>
    %c0_i32_61 = arith.constant 0 : i32
    %129 = arith.sitofp %c0_i32_61 : i32 to f32
    %130 = vector.shape_cast %2 : vector<1x256xi1> to vector<1x256xi1>
    %131 = vector.broadcast %130 : vector<1x256xi1> to vector<4x256xi1>
    %132 = vector.broadcast %129 : f32 to vector<4x256xf32>
    %133 = arith.select %131, %128, %132 : vector<4x256xi1>, vector<4x256xf32>
    %c24_62 = arith.constant 24 : index
    %c0_63 = arith.constant 0 : index
    %134 = vector.load %arg5[%c24_62, %c0_63] : memref<37x256xf32, #tpu.memory_space<vmem>>, vector<4x256xf32>
    tpu.vector_store %arg5[%c24_62, %c0_63], %133 {strides = array<i32>} : memref<37x256xf32, #tpu.memory_space<vmem>>, vector<4x256xf32>,
    %cst_64 = arith.constant 0.000000e+00 : f32
    %135 = vector.broadcast %cst_64 : f32 to vector<4x16xf32>
    %136 = vector.extract_strided_slice %84 {offsets = [0, 16], sizes = [4, 240], strides = [1, 1]} : vector<4x256xf32> to vector<4x240xf32>
    %137 = tpu.concatenate %136, %135 in 1 : vector<4x240xf32>, vector<4x16xf32> -> vector<4x256xf32>
    %c28_65 = arith.constant 28 : index
    %c0_66 = arith.constant 0 : index
    %138 = vector.load %arg5[%c28_65, %c0_66] : memref<37x256xf32, #tpu.memory_space<vmem>>, vector<4x256xf32>
    tpu.vector_store %arg5[%c28_65, %c0_66], %137 {strides = array<i32>} : memref<37x256xf32, #tpu.memory_space<vmem>>, vector<4x256xf32>,
    %cst_67 = arith.constant 0.000000e+00 : f32
    %139 = vector.broadcast %cst_67 : f32 to vector<4x17xf32>
    %140 = vector.extract_strided_slice %84 {offsets = [0, 17], sizes = [4, 239], strides = [1, 1]} : vector<4x256xf32> to vector<4x239xf32>
    %141 = tpu.concatenate %140, %139 in 1 : vector<4x239xf32>, vector<4x17xf32> -> vector<4x256xf32>
    %c0_i32_68 = arith.constant 0 : i32
    %142 = arith.sitofp %c0_i32_68 : i32 to f32
    %143 = vector.shape_cast %4 : vector<1x256xi1> to vector<1x256xi1>
    %144 = vector.broadcast %143 : vector<1x256xi1> to vector<4x256xi1>
    %145 = vector.broadcast %142 : f32 to vector<4x256xf32>
    %146 = arith.select %144, %141, %145 : vector<4x256xi1>, vector<4x256xf32>
    %c32_69 = arith.constant 32 : index
    %c0_70 = arith.constant 0 : index
    %147 = vector.load %arg5[%c32_69, %c0_70] : memref<37x256xf32, #tpu.memory_space<vmem>>, vector<4x256xf32>
    tpu.vector_store %arg5[%c32_69, %c0_70], %146 {strides = array<i32>} : memref<37x256xf32, #tpu.memory_space<vmem>>, vector<4x256xf32>,
    %c0_71 = arith.constant 0 : index
    %c0_72 = arith.constant 0 : index
    %148 = vector.load %arg5[%c0_71, %c0_72] : memref<37x256xf32, #tpu.memory_space<vmem>>, vector<37x256xf32>
    %cst_73 = arith.constant dense<0.000000e+00> : vector<8x256xf32>
    %149 = tpu.matmul %7, %148, %cst_73 {dimension_numbers = #tpu.dot_dimension_numbers<[1], [0], [0], [1], [0, 0, 1, 1], [], []>} : vector<8x37xf32>, vector<37x256xf32>, vector<8x256xf32> -> vector<8x256xf32>
    %150 = arith.negf %149 : vector<8x256xf32>
    %151 = math.exp %150 : vector<8x256xf32>
    %cst_74 = arith.constant 1.000000e+00 : f32
    %152 = vector.broadcast %cst_74 : f32 to vector<8x256xf32>
    %153 = arith.addf %152, %151 : vector<8x256xf32>
    %154 = arith.divf %152, %153 : vector<8x256xf32>
    %c1_75 = arith.constant 1 : index
    %c0_76 = arith.constant 0 : index
    %c0_77 = arith.constant 0 : index
    %155 = vector.load %arg4[%c1_75, %c0_76, %c0_77] : memref<2x8x256xf32, #tpu.memory_space<vmem>>, vector<1x8x256xf32>
    %156 = vector.shape_cast %155 : vector<1x8x256xf32> to vector<8x256xf32>
    %157 = vector.shape_cast %154 : vector<8x256xf32> to vector<1x8x256xf32>
    tpu.vector_store %arg4[%c1_75, %c0_76, %c0_77], %157 {strides = array<i32>} : memref<2x8x256xf32, #tpu.memory_space<vmem>>, vector<1x8x256xf32>,
    return
  }
  func.func @transform_0(%arg0: i32) -> (i32, i32, i32) {
    %c0_i32 = arith.constant 0 : i32
    %c0_i32_0 = arith.constant 0 : i32
    %c0_i32_1 = arith.constant 0 : i32
    return %arg0, %c0_i32, %c0_i32_0 : i32, i32, i32
  }
  func.func @transform_1(%arg0: i32) -> (i32, i32) {
    %c0_i32 = arith.constant 0 : i32
    %c0_i32_0 = arith.constant 0 : i32
    %c0_i32_1 = arith.constant 0 : i32
    return %c0_i32, %c0_i32_0 : i32, i32
  }
  func.func @transform_2(%arg0: i32) -> (i32, i32) {
    %c0_i32 = arith.constant 0 : i32
    %c0_i32_0 = arith.constant 0 : i32
    %c0_i32_1 = arith.constant 0 : i32
    return %c0_i32, %c0_i32_0 : i32, i32
  }
  func.func @transform_3(%arg0: i32) -> (i32, i32, i32) {
    %c0_i32 = arith.constant 0 : i32
    %c0_i32_0 = arith.constant 0 : i32
    %c0_i32_1 = arith.constant 0 : i32
    return %arg0, %c0_i32, %c0_i32_0 : i32, i32, i32
  }
}

</mosaic_0001>

<bundles_post_ra>
// kernel: tpu_custom_call.1
= control target key start
LH: loop header
LB: loop body
LE: loop exit
PB: predicated region body
PF: predicated region fallthrough
CT: control target
= control target key end

     0   :  { %8 = vsyncpa [#allocation4], 0  ;;  %s932_s0 = inlined_call_operand.hbm [shape: f32[2,4,256], index: 0, kind: input, shape index: {}]   ;;  %s933_s1 = inlined_call_operand.hbm [shape: f32[8,37], index: 1, kind: input, shape index: {}]   ;;  %s934_s2 = inlined_call_operand.hbm [shape: s32[1,256], index: 2, kind: input, shape index: {}]   ;;  %s935_s3 = inlined_call_operand.hbm [shape: f32[2,8,256], index: 3, kind: output, shape index: {}]  }
   0x1   :  { %9 = vsyncpa [#allocation7], 0 }
   0x2   :  { %10 = vsyncpa [#allocation5], 0  ;;  %s712_s12 = smov [#allocation6]   ;;  %s713_s14 = smov [#allocation3]  }
   0x3   :  { %s29_s13 = sshll.u32 %s712_s12, 4  ;;  %s16_s15 = sshll.u32 %s713_s14, 4  ;;  %s30_s13 = int_to_ptr.vmem [resolvable:$true] %s29_s13  ;;  %s750_s15 = int_to_ptr.vmem [resolvable:$true] %s16_s15 }
   0x4   :  { %s618_s18 = scalar_lea.hbm %s933_s1, 128 }
   0x5   :  { %p619_p0 = scmp.ne.s32.totalorder %s933_s1, %s618_s18  ;;  %p622_p1 = scmp.lt.u32.totalorder %s618_s18, %s933_s1 }
   0x7   :  { %p624_p2 = pnand %p622_p1, %p619_p0 }
   0x9   :  { %627 = shalt.err (!%p624_p2)
}
   0xa   :  { %s628_s23 = scalar_lea.vmem %s30_s13, 128  ;;  %p633_p4 = scmp.lt.s32.totalorder %s30_s13, %s30_s13 }
   0xb   :  { %p629_p3 = scmp.ne.s32.totalorder %s30_s13, %s628_s23  ;;  %p634_p5 = scmp.lt.s32.totalorder %s628_s23, %s628_s23 }
   0xd   :  { %p635_p6 = por %p634_p5, %p633_p4 }
   0xf   :  { %p636_p7 = pnand %p635_p6, %p629_p3 }
  0x11   :  { %639 = shalt.err (!%p636_p7)
}
  0x12   :  { %32 = dma.hbm_to_vmem [thread:$0]  %s933_s1, 128, %s30_s13, [#allocation7]  }
  0x13   :  { %s640_s28 = scalar_lea.hbm %s932_s0, 256 }
  0x14   :  { %p641_p8 = scmp.ne.s32.totalorder %s932_s0, %s640_s28  ;;  %p644_p9 = scmp.lt.u32.totalorder %s640_s28, %s932_s0 }
  0x16   :  { %p646_p10 = pnand %p644_p9, %p641_p8 }
  0x18   :  { %649 = shalt.err (!%p646_p10)
}
  0x19   :  { %s650_s6 = scalar_lea.vmem %s750_s15, 256  ;;  %p655_p12 = scmp.lt.s32.totalorder %s750_s15, %s750_s15 }
  0x1a   :  { %p651_p11 = scmp.ne.s32.totalorder %s750_s15, %s650_s6  ;;  %p656_p13 = scmp.lt.s32.totalorder %s650_s6, %s650_s6 }
  0x1c   :  { %p657_p0 = por %p656_p13, %p655_p12 }
  0x1e   :  { %p658_p1 = pnand %p657_p0, %p651_p11 }
  0x20   :  { %661 = shalt.err (!%p658_p1)
}
  0x21   :  { %s714_s1 = smov 128   ;;  %s715_s7 = smov 8  }
  0x22   :  { %22 = dma.hbm_to_vmem [thread:$0]  %s932_s0, 256, %s750_s15, [#allocation4], %s714_s1, %s714_s1, %s715_s7  }
  0x23   :  { %s716_s10 = smov [#allocation8]   ;;  %s662_s14 = scalar_lea.hbm %s934_s2, 32 }
  0x24   :  { %s39_s11 = sshll.u32 %s716_s10, 4  ;;  %p663_p2 = scmp.ne.s32.totalorder %s934_s2, %s662_s14  ;;  %s40_s11 = int_to_ptr.vmem [resolvable:$true] %s39_s11 }
  0x25   :  { %p666_p3 = scmp.lt.u32.totalorder %s662_s14, %s934_s2 }
  0x27   :  { %p668_p4 = pnand %p666_p3, %p663_p2 }
  0x29   :  { %671 = shalt.err (!%p668_p4)
}
  0x2a   :  { %s672_s20 = scalar_lea.vmem %s40_s11, 32  ;;  %p677_p6 = scmp.lt.s32.totalorder %s40_s11, %s40_s11 }
  0x2b   :  { %p673_p5 = scmp.ne.s32.totalorder %s40_s11, %s672_s20  ;;  %p678_p7 = scmp.lt.s32.totalorder %s672_s20, %s672_s20 }
  0x2d   :  { %p679_p8 = por %p678_p7, %p677_p6 }
  0x2f   :  { %p680_p9 = pnand %p679_p8, %p673_p5 }
  0x31   :  { %683 = shalt.err (!%p680_p9)
}
  0x32   :  { %42 = dma.hbm_to_vmem [thread:$0]  %s934_s2, 32, %s40_s11, [#allocation7]  }
  0x33   :  { %706 = dma.done.wait [#allocation4], 256  }
  0x34   :  { %707 = vsyncadd [#allocation4], 4294967040 }
  0x35   :  { %708 = dma.done.wait [#allocation7], 160  }
  0x36   :  { %709 = vsyncadd [#allocation7], 4294967136  ;;  %v55_v0 = vlaneseq  ;;  %v717_v1 = vmov 1.0   ;;  %v63_v2 = vld [vmem:[#allocation3] sm:$0xff]  ;;  %s718_s21 = smov 16   ;;  %s719_s22 = smov 1  }
  0x37   :  { %90 = vrot.lane.b32.xlu1 %v63_v2, %s718_s21  ;;  %149 = vst [vmem:[#allocation2 + $0x20] sm:$0xf] %v63_v2  ;;  %129 = vrot.lane.b32.xlu0 %v63_v2, %s719_s22  ;;  %v65_v3 = vcombine.high %v63_v2, %v63_v2  ;;  %s720_s23 = smov 17   ;;  %s721_s2 = smov 15   ;;  %v795_v4 = vld [vmem:[#allocation3 + $0x8] sm:$0xff]  ;;  %v726_v6 = vmov 0.0  }
  0x38   :  { %vm57_vm0 = vcmp.lt.s32.totalorder %v55_v0, 256  ;;  %s722_s24 = smov 127   ;;  %s723_s25 = smov 113   ;;  %v799_v5 = vcombine.high %v795_v4, %v795_v4  ;;  %296 = vmatprep.mubr.f32.mxu0 %v726_v6  ;;  %516 = vmatprep.mubr.f32.mxu1 %v726_v6  ;;  %v52_v7 = vld [vmem:[#allocation8] sm:$0x3]  ;;  %v77_v8 = vshrl.u32 %v55_v0, 7 }
  0x39   :  { %60 = vst.msk [vmem:[#allocation2 + $0x44] ss:$8 sm:$0x3] %vm57_vm0, %v717_v1  ;;  %150 = vst [vmem:[#allocation2 + $0x28] sm:$0xf] %v65_v3  ;;  %s724_s26 = smov 112  }
  0x3a   :  { %s725_s27 = smov 111   ;;  %vm53_vm1 = vcmp.ge.s32.totalorder %v52_v7, 1  ;;  %v78_v9 = vsub.s32 0, %v77_v8  ;;  %v727_v10 = vmov 0   ;;  %vm94_vm2 = vcmask 130048   ;;  %s728_s28 = smov [#allocation9]  }
  0x3b   :  { %66 = vrot.lane.b32.xlu0 %v63_v2, %s720_s23  ;;  %92 = vrot.lane.b32.xlu1 %v65_v3, %s718_s21  ;;  %v75_v11 = vsel %vm53_vm1, 1, %v727_v10  ;;  %vm133_vm3 = vcmask 7168   ;;  %v82_v13 = vsub.s32 1, %v77_v8  ;;  %vm54_vm5 = vcmp.lt.s32.totalorder %v52_v7, 15  ;;  %s543_s29 = sshll.u32 %s728_s28, 4  ;;  %s544_s29 = int_to_ptr.vmem [resolvable:$true] %s543_s29 }
  0x3c   :  { %v819_v12 = vrot.slane %v75_v11, %v78_v9  ;;  %vm70_vm6 = vcmask 138240   ;;  %v114_v24 = vsel %vm54_vm5, 1, %v727_v10  ;;  %vm109_vm8 = vcmask 121856   ;;  %s684_s30 = scalar_lea.vmem %s544_s29, 512  ;;  %p689_p11 = scmp.lt.s32.totalorder %s544_s29, %s544_s29 }
  0x3d   :  { %v826_v21 = vrot.slane %v75_v11, %v82_v13  ;;  %v833_v29 = vrot.slane %v114_v24, %v78_v9  ;;  %v835_v30 = vrot.slane %v114_v24, %v82_v13  ;;  %vm155_vm11 = vcmask 1039360   ;;  %p685_p10 = scmp.ne.s32.totalorder %s544_s29, %s684_s30  ;;  %p690_p12 = scmp.lt.s32.totalorder %s684_s30, %s684_s30 }
  0x3e   :  { %vm84_vm4 = vcmp.eq.s32.totalorder %v819_v12, 1  ;;  %vm174_vm12 = vcmask 924672   ;;  %vm187_vm13 = vcmask 916480   ;;  %vm202_vm14 = vcmask 908288  }
  0x3f   :  { %68 = vrot.lane.b32.xlu1 %v65_v3, %s720_s23  ;;  %131 = vrot.lane.b32.xlu0 %v65_v3, %s719_s22  ;;  %vm85_vm7 = vcmp.eq.s32.totalorder %v826_v21, 1  ;;  %vm123_vm9 = vcmp.eq.s32.totalorder %v833_v29, 1  ;;  %vm124_vm10 = vcmp.eq.s32.totalorder %v835_v30, 1  ;;  %vm225_vm15 = vcmask 1044480   ;;  %p691_p13 = por %p690_p12, %p689_p11 }
  0x40   :  { %vm221_vm0 = vcmask 302080  }
  0x41   :  { %p692_p0 = pnand %p691_p13, %p685_p10 }
  0x43   :  { %107 = vrot.lane.b32.xlu1 %v65_v3, %s721_s2  ;;  %105 = vrot.lane.b32.xlu0 %v63_v2, %s721_s2 }
  0x47   :  { %151 = vrot.lane.b32.xlu1 %v63_v2, %s722_s24  ;;  %153 = vrot.lane.b32.xlu0 %v65_v3, %s722_s24 }
  0x4b   :  { %172 = vrot.lane.b32.xlu1 %v65_v3, %s723_s25  ;;  %185 = vrot.lane.b32.xlu0 %v65_v3, %s724_s26 }
  0x4f   :  { %170 = vrot.lane.b32.xlu1 %v63_v2, %s723_s25  ;;  %183 = vrot.lane.b32.xlu0 %v63_v2, %s724_s26 }
  0x53   :  { %361 = vrot.lane.b32.xlu1 %v799_v5, %s719_s22  ;;  %359 = vrot.lane.b32.xlu0 %v795_v4, %s719_s22 }
  0x57   :  { %335 = vrot.lane.b32.xlu1 %v799_v5, %s718_s21  ;;  %333 = vrot.lane.b32.xlu0 %v795_v4, %s718_s21 }
  0x5b   :  { %323 = vrot.lane.b32.xlu1 %v799_v5, %s720_s23  ;;  %321 = vrot.lane.b32.xlu0 %v795_v4, %s720_s23 }
  0x5f   :  { %349 = vrot.lane.b32.xlu1 %v799_v5, %s721_s2  ;;  %347 = vrot.lane.b32.xlu0 %v795_v4, %s721_s2 }
  0x63   :  { %382 = vrot.lane.b32.xlu1 %v799_v5, %s722_s24  ;;  %200 = vrot.lane.b32.xlu0 %v65_v3, %s725_s27 }
  0x67   :  { %380 = vrot.lane.b32.xlu1 %v795_v4, %s722_s24  ;;  %198 = vrot.lane.b32.xlu0 %v63_v2, %s725_s27 }
  0x6b   :  { %400 = vrot.lane.b32.xlu1 %v799_v5, %s723_s25  ;;  %412 = vrot.lane.b32.xlu0 %v799_v5, %s724_s26 }
  0x6f   :  { %398 = vrot.lane.b32.xlu1 %v795_v4, %s723_s25  ;;  %410 = vrot.lane.b32.xlu0 %v795_v4, %s724_s26 }
  0x73   :  { %424 = vrot.lane.b32.xlu1 %v795_v4, %s725_s27  ;;  %426 = vrot.lane.b32.xlu0 %v799_v5, %s725_s27 }
  0xa9   :  { %v91_v14 = vpop.permute.xlu1 %90  ;;  %v130_v15 = vpop.permute.xlu0 %129 }
  0xaa   :  { %v97_v16 = vsel %vm94_vm2, 0.0, %v91_v14  ;;  %v137_v17 = vsel %vm133_vm3, 0.0, %v130_v15 }
  0xab   :  { %v99_v18 = vrot.slane %v97_v16, 4  ;;  %v138_v19 = vsel %vm84_vm4, %v137_v17, 0.0 }
  0xac   :  { %v142_v20 = vrot.slane %v138_v19, 4 }
  0xad   :  { %103 = vst [vmem:[#allocation2] sm:$0xf0] %v99_v18  ;;  %v67_v22 = vpop.permute.xlu0 %66  ;;  %v93_v23 = vpop.permute.xlu1 %92 }
  0xae   :  { %146 = vst [vmem:[#allocation2 + $0x10] sm:$0xf0] %v142_v20  ;;  %v74_v25 = vsel %vm70_vm6, 0.0, %v67_v22  ;;  %v95_v26 = vsel %vm94_vm2, %v91_v14, %v93_v23 }
  0xaf   :  { %v86_v27 = vsel %vm84_vm4, %v74_v25, 0.0  ;;  %v100_v28 = vrot.slane %v95_v26, 4 }
  0xb0   :  { %88 = vst [vmem:[#allocation2] sm:$0xf] %v86_v27 }
  0xb1   :  { %104 = vst [vmem:[#allocation2 + $0x8] sm:$0xf0] %v100_v28  ;;  %v69_v31 = vpop.permute.xlu1 %68  ;;  %v132_v32 = vpop.permute.xlu0 %131 }
  0xb2   :  { %v71_v33 = vsel %vm70_vm6, %v67_v22, %v69_v31  ;;  %v134_v34 = vsel %vm133_vm3, %v130_v15, %v132_v32 }
  0xb3   :  { %v87_v35 = vsel %vm85_vm7, %v71_v33, 0.0  ;;  %v139_v36 = vsel %vm85_vm7, %v134_v34, 0.0 }
  0xb4   :  { %89 = vst [vmem:[#allocation2 + $0x8] sm:$0xf] %v87_v35  ;;  %v143_v37 = vrot.slane %v139_v36, 4 }
  0xb5   :  { %v108_v38 = vpop.permute.xlu1 %107  ;;  %v106_v39 = vpop.permute.xlu0 %105 }
  0xb6   :  { %147 = vst [vmem:[#allocation2 + $0x18] sm:$0xf0] %v143_v37  ;;  %v110_v40 = vsel %vm109_vm8, %v106_v39, %v108_v38  ;;  %v113_v41 = vsel %vm109_vm8, 0.0, %v106_v39 }
  0xb7   :  { %v125_v42 = vsel %vm123_vm9, %v113_v41, 0.0  ;;  %v126_v43 = vsel %vm124_vm10, %v110_v40, 0.0  ;;  %v211_v56 = vld [vmem:[#allocation2] sm:$0xff] }
  0xb8   :  { %127 = vst [vmem:[#allocation2 + $0x10] sm:$0xf] %v125_v42  ;;  %128 = vst [vmem:[#allocation2 + $0x18] sm:$0xf] %v126_v43 }
  0xb9   :  { %v152_v44 = vpop.permute.xlu1 %151  ;;  %v154_v45 = vpop.permute.xlu0 %153 }
  0xba   :  { %v156_v46 = vsel %vm155_vm11, %v152_v44, %v154_v45  ;;  %v159_v47 = vsel %vm155_vm11, %v154_v45, 0.0 }
  0xbb   :  { %v160_v48 = vsel %vm123_vm9, %v156_v46, 0.0  ;;  %v161_v49 = vsel %vm124_vm10, %v159_v47, 0.0  ;;  %v212_v59 = vld [vmem:[#allocation2 + $0x8] sm:$0xff] }
  0xbc   :  { %v164_v50 = vrot.slane %v160_v48, 4  ;;  %v165_v51 = vrot.slane %v161_v49, 4 }
  0xbd   :  { %v173_v52 = vpop.permute.xlu1 %172  ;;  %v186_v53 = vpop.permute.xlu0 %185 }
  0xbe   :  { %168 = vst [vmem:[#allocation2 + $0x20] sm:$0xf0] %v164_v50  ;;  %169 = vst [vmem:[#allocation2 + $0x28] sm:$0xf0] %v165_v51  ;;  %v178_v54 = vsel %vm174_vm12, %v173_v52, 0.0  ;;  %v190_v55 = vsel %vm187_vm13, %v186_v53, 0.0 }
  0xbf   :  { %v180_v57 = vsel %vm85_vm7, %v178_v54, 0.0  ;;  %v193_v58 = vrot.slane %v190_v55, 4  ;;  %v214_v60 = vld [vmem:[#allocation2 + $0x18] sm:$0xff]  ;;  %v213_v61 = vld [vmem:[#allocation2 + $0x10] sm:$0xff] }
  0xc0   :  { %182 = vst [vmem:[#allocation2 + $0x38] sm:$0xf] %v180_v57  ;;  %v566_v62 = vpack.c.bf16 %v214_v60, %v212_v59  ;;  %v568_v63 = vpack.c.bf16 %v213_v61, %v211_v56 }
  0xc1   :  { %197 = vst [vmem:[#allocation2 + $0x38] sm:$0xf0] %v193_v58  ;;  %v171_v0 = vpop.permute.xlu1 %170  ;;  %v184_v1 = vpop.permute.xlu0 %183 }
  0xc2   :  { %v175_v2 = vsel %vm174_vm12, %v171_v0, %v173_v52  ;;  %v188_v3 = vsel %vm187_vm13, %v184_v1, %v186_v53  ;;  %567 = vmatprep.subr.bf16.mxu0 %v566_v62 }
  0xc3   :  { %v179_v6 = vsel %vm84_vm4, %v175_v2, 0.0  ;;  %v192_v7 = vrot.slane %v188_v3, 4  ;;  %569 = vmatpush1.bf16.msra.mxu0 %v568_v63 }
  0xc4   :  { %181 = vst [vmem:[#allocation2 + $0x30] sm:$0xf] %v179_v6 }
  0xc5   :  { %196 = vst [vmem:[#allocation2 + $0x30] sm:$0xf0] %v192_v7  ;;  %v362_v8 = vpop.permute.xlu1 %361  ;;  %v360_v9 = vpop.permute.xlu0 %359  ;;  %v216_v10 = vld [vmem:[#allocation2 + $0x28] sm:$0xff]  ;;  %v215_v11 = vld [vmem:[#allocation2 + $0x20] sm:$0xff] }
  0xc6   :  { %v363_v13 = vsel %vm133_vm3, %v360_v9, %v362_v8  ;;  %v366_v14 = vsel %vm133_vm3, 0.0, %v360_v9  ;;  %379 = vst [vmem:[#allocation2 + $0x28] sm:$0xf] %v799_v5  ;;  %378 = vst [vmem:[#allocation2 + $0x20] sm:$0xf] %v795_v4 }
  0xc7   :  { %v367_v15 = vsel %vm84_vm4, %v366_v14, 0.0  ;;  %v368_v16 = vsel %vm85_vm7, %v363_v13, 0.0 }
  0xc8   :  { %v371_v17 = vrot.slane %v367_v15, 4  ;;  %v372_v18 = vrot.slane %v368_v16, 4  ;;  %v218_v19 = vld [vmem:[#allocation2 + $0x38] sm:$0xff] }
  0xc9   :  { %v336_v20 = vpop.permute.xlu1 %335  ;;  %v334_v22 = vpop.permute.xlu0 %333  ;;  %v570_v23 = vpack.c.bf16 %v218_v19, %v216_v10 }
  0xca   :  { %375 = vst [vmem:[#allocation2 + $0x10] sm:$0xf0] %v371_v17  ;;  %376 = vst [vmem:[#allocation2 + $0x18] sm:$0xf0] %v372_v18  ;;  %v337_v24 = vsel %vm94_vm2, %v334_v22, %v336_v20  ;;  %v339_v5 = vsel %vm94_vm2, 0.0, %v334_v22 }
  0xcb   :  { %v341_v25 = vrot.slane %v339_v5, 4  ;;  %v342_v4 = vrot.slane %v337_v24, 4  ;;  %571 = vmatprep.subr.bf16.mxu0 %v570_v23 }
  0xcc   :  { %v217_v26 = vld [vmem:[#allocation2 + $0x30] sm:$0xff] }
  0xcd   :  { %345 = vst [vmem:[#allocation2] sm:$0xf0] %v341_v25  ;;  %346 = vst [vmem:[#allocation2 + $0x8] sm:$0xf0] %v342_v4  ;;  %v324_v27 = vpop.permute.xlu1 %323  ;;  %v322_v28 = vpop.permute.xlu0 %321  ;;  %v572_v31 = vpack.c.bf16 %v217_v26, %v215_v11  ;;  %v62_v11 = vld [vmem:[#allocation6] sm:$0xff] }
  0xce   :  { %v325_v32 = vsel %vm70_vm6, %v322_v28, %v324_v27  ;;  %v328_v33 = vsel %vm70_vm6, 0.0, %v322_v28 }
  0xcf   :  { %v329_v34 = vsel %vm84_vm4, %v328_v33, 0.0  ;;  %v330_v35 = vsel %vm85_vm7, %v325_v32, 0.0  ;;  %573 = vmatpush1.bf16.msra.mxu0 %v572_v31 }
  0xd0   :  { %331 = vst [vmem:[#allocation2] sm:$0xf] %v329_v34  ;;  %332 = vst [vmem:[#allocation2 + $0x8] sm:$0xf] %v330_v35 }
  0xd1   :  { %v350_v36 = vpop.permute.xlu1 %349  ;;  %v348_v37 = vpop.permute.xlu0 %347 }
  0xd2   :  { %v351_v38 = vsel %vm109_vm8, %v348_v37, %v350_v36  ;;  %v354_v39 = vsel %vm109_vm8, 0.0, %v348_v37 }
  0xd3   :  { %v355_v40 = vsel %vm123_vm9, %v354_v39, 0.0  ;;  %v356_v41 = vsel %vm124_vm10, %v351_v38, 0.0 }
  0xd4   :  { %357 = vst [vmem:[#allocation2 + $0x10] sm:$0xf] %v355_v40  ;;  %358 = vst [vmem:[#allocation2 + $0x18] sm:$0xf] %v356_v41 }
  0xd5   :  { %v383_v42 = vpop.permute.xlu1 %382  ;;  %v201_v43 = vpop.permute.xlu0 %200 }
  0xd6   :  { %v387_v44 = vsel %vm155_vm11, %v383_v42, 0.0  ;;  %v206_v45 = vsel %vm202_vm14, %v201_v43, 0.0 }
  0xd7   :  { %v389_v46 = vsel %vm124_vm10, %v387_v44, 0.0  ;;  %v208_v47 = vsel %vm124_vm10, %v206_v45, 0.0  ;;  %v437_v53 = vld [vmem:[#allocation2 + $0x8] sm:$0xff]  ;;  %v436_v57 = vld [vmem:[#allocation2] sm:$0xff] }
  0xd8   :  { %v393_v48 = vrot.slane %v389_v46, 4  ;;  %210 = vst [vmem:[#allocation2 + $0x48] sm:$0xf] %v208_v47 }
  0xd9   :  { %v381_v49 = vpop.permute.xlu1 %380  ;;  %v199_v50 = vpop.permute.xlu0 %198 }
  0xda   :  { %397 = vst [vmem:[#allocation2 + $0x28] sm:$0xf0] %v393_v48  ;;  %v384_v51 = vsel %vm155_vm11, %v381_v49, %v383_v42  ;;  %v203_v52 = vsel %vm202_vm14, %v199_v50, %v201_v43 }
  0xdb   :  { %v388_v54 = vsel %vm123_vm9, %v384_v51, 0.0  ;;  %v207_v55 = vsel %vm123_vm9, %v203_v52, 0.0  ;;  %v439_v56 = vld [vmem:[#allocation2 + $0x18] sm:$0xff]  ;;  %v438_v58 = vld [vmem:[#allocation2 + $0x10] sm:$0xff] }
  0xdc   :  { %v392_v59 = vrot.slane %v388_v54, 4  ;;  %209 = vst [vmem:[#allocation2 + $0x40] sm:$0xf] %v207_v55  ;;  %v574_v60 = vpack.c.bf16 %v439_v56, %v437_v53  ;;  %v576_v61 = vpack.c.bf16 %v438_v58, %v436_v57 }
  0xdd   :  { %v401_v62 = vpop.permute.xlu1 %400  ;;  %v413_v63 = vpop.permute.xlu0 %412 }
  0xde   :  { %396 = vst [vmem:[#allocation2 + $0x20] sm:$0xf0] %v392_v59  ;;  %v405_v0 = vsel %vm174_vm12, %v401_v62, 0.0  ;;  %v416_v1 = vsel %vm187_vm13, %v413_v63, 0.0  ;;  %575 = vmatprep.subr.bf16.mxu1 %v574_v60 }
  0xdf   :  { %v407_v2 = vsel %vm85_vm7, %v405_v0, 0.0  ;;  %v419_v3 = vrot.slane %v416_v1, 4  ;;  %577 = vmatpush1.bf16.msra.mxu1 %v576_v61  ;;  %v220_v6 = vld [vmem:[#allocation2 + $0x48] sm:$0x1f] }
  0xe0   :  { %409 = vst [vmem:[#allocation2 + $0x38] sm:$0xf] %v407_v2  ;;  %556 = vmatprep.subr.msk.mxu0 %vm225_vm15, %v220_v6 }
  0xe1   :  { %423 = vst [vmem:[#allocation2 + $0x38] sm:$0xf0] %v419_v3  ;;  %v399_v7 = vpop.permute.xlu1 %398  ;;  %v411_v8 = vpop.permute.xlu0 %410  ;;  %v441_v20 = vld [vmem:[#allocation2 + $0x28] sm:$0xff] }
  0xe2   :  { %v402_v9 = vsel %vm174_vm12, %v399_v7, %v401_v62  ;;  %v414_v10 = vsel %vm187_vm13, %v411_v8, %v413_v63 }
  0xe3   :  { %v406_v13 = vsel %vm84_vm4, %v402_v9, 0.0  ;;  %v418_v21 = vrot.slane %v414_v10, 4  ;;  %v219_v14 = vld [vmem:[#allocation2 + $0x40] sm:$0x1f] }
  0xe4   :  { %408 = vst [vmem:[#allocation2 + $0x30] sm:$0xf] %v406_v13  ;;  %557 = vmatpush1.msk.msra.mxu0 %vm225_vm15, %v219_v14 }
  0xe5   :  { %422 = vst [vmem:[#allocation2 + $0x30] sm:$0xf0] %v418_v21  ;;  %v425_v15 = vpop.permute.xlu1 %424  ;;  %v427_v16 = vpop.permute.xlu0 %426  ;;  %558 = vmatmul.mubr.msk.f32.vlgmr.msra.gmra.mrb[0].mxu0 %vm221_vm0, %v62_v11  ;;  %v440_v24 = vld [vmem:[#allocation2 + $0x20] sm:$0xff] }
  0xe6   :  { %v428_v17 = vsel %vm202_vm14, %v425_v15, %v427_v16  ;;  %v431_v18 = vsel %vm202_vm14, %v427_v16, 0.0 }
  0xe7   :  { %v432_v19 = vsel %vm123_vm9, %v428_v17, 0.0  ;;  %v433_v12 = vsel %vm124_vm10, %v431_v18, 0.0 }
  0xe8   :  { %434 = vst [vmem:[#allocation2 + $0x40] sm:$0xf] %v432_v19  ;;  %435 = vst [vmem:[#allocation2 + $0x48] sm:$0xf] %v433_v12  ;;  %v443_v22 = vld [vmem:[#allocation2 + $0x38] sm:$0xff] }
  0xe9   :  { %v578_v23 = vpack.c.bf16 %v443_v22, %v441_v20 }
  0xeb   :  { %579 = vmatprep.subr.bf16.mxu1 %v578_v23 }
  0xec   :  { %v442_v5 = vld [vmem:[#allocation2 + $0x30] sm:$0xff] }
  0xed   :  { %v580_v25 = vpack.c.bf16 %v442_v5, %v440_v24 }
  0xef   :  { %581 = vmatpush1.bf16.msra.mxu1 %v580_v25  ;;  %v445_v4 = vld [vmem:[#allocation2 + $0x48] sm:$0x1f]  ;;  %v444_v26 = vld [vmem:[#allocation2 + $0x40] sm:$0x1f] }
  0xf0   :  { %561 = vmatprep.subr.msk.mxu1 %vm225_vm15, %v445_v4 }
  0xf3   :  { %562 = vmatpush1.msk.msra.mxu1 %vm225_vm15, %v444_v26 }
  0xf4   :  { %563 = vmatmul.mubr.msk.f32.vlgmr.msra.gmra.mrb[0].mxu1 %vm221_vm0, %v62_v11 }
 0x1b8   :  { %v298_v29 = vpop.f32.mrb[0].mxu0 }
 0x1b9   :  { %v559_v30 = vmul.f32 -1.442695, %v298_v29  ;;  %v300_v27 = vpop.f32.mrb[1].mxu0 }
 0x1ba   :  { %v560_v28 = vmul.f32 -1.442695, %v300_v27 }
 0x1bb   :  { %602 = vpow2.f32 %v559_v30 }
 0x1bc   :  { %604 = vpow2.f32 %v560_v28 }
 0x1c5   :  { %v603_v31 = vpop.eup %602 }
 0x1c6   :  { %v605_v32 = vpop.eup %604  ;;  %v309_v33 = vadd.f32 1.0, %v603_v31 }
 0x1c7   :  { %v310_v34 = vadd.f32 1.0, %v605_v32  ;;  %v518_v35 = vpop.f32.mrb[0].mxu1 }
 0x1c8   :  { %606 = vrcp.f32 %v309_v33  ;;  %v564_v36 = vmul.f32 -1.442695, %v518_v35  ;;  %v520_v37 = vpop.f32.mrb[1].mxu1 }
 0x1c9   :  { %608 = vrcp.f32 %v310_v34  ;;  %v565_v38 = vmul.f32 -1.442695, %v520_v37 }
 0x1ca   :  { %610 = vpow2.f32 %v564_v36 }
 0x1cb   :  { %612 = vpow2.f32 %v565_v38 }
 0x1d2   :  { %v607_v39 = vpop.eup %606 }
 0x1d3   :  { %v609_v40 = vpop.eup %608  ;;  %315 = vst [vmem:[#allocation9] sm:$0xff] %v607_v39 }
 0x1d4   :  { %v611_v41 = vpop.eup %610  ;;  %316 = vst [vmem:[#allocation9 + $0x8] sm:$0xff] %v609_v40 }
 0x1d5   :  { %v613_v42 = vpop.eup %612  ;;  %v529_v43 = vadd.f32 1.0, %v611_v41 }
 0x1d6   :  { %v530_v44 = vadd.f32 1.0, %v613_v42 }
 0x1d7   :  { %614 = vrcp.f32 %v529_v43 }
 0x1d8   :  { %616 = vrcp.f32 %v530_v44 }
 0x1e1   :  { %v615_v45 = vpop.eup %614 }
 0x1e2   :  { %v617_v46 = vpop.eup %616  ;;  %536 = vst [vmem:[#allocation9 + $0x10] sm:$0xff] %v615_v45 }
 0x1e3   :  { %537 = vst [vmem:[#allocation9 + $0x18] sm:$0xff] %v617_v46 }
 0x1e4   :  { %695 = shalt.err (!%p692_p0)
}
 0x1e5   :  { %s696_s6 = scalar_lea.hbm %s935_s3, 512 }
 0x1e6   :  { %p697_p1 = scmp.ne.s32.totalorder %s935_s3, %s696_s6  ;;  %p700_p2 = scmp.lt.u32.totalorder %s696_s6, %s935_s3 }
 0x1e8   :  { %p702_p3 = pnand %p700_p2, %p697_p1 }
 0x1ea   :  { %705 = shalt.err (!%p702_p3)
}
 0x1eb   :  { %s729_s10 = smov 256  }
 0x1ec   :  { %549 = dma.vmem_to_hbm [thread:$0]  %s544_s29, 512, %s935_s3, [#allocation5], %s729_s10, %s729_s10, %s718_s21  }
 0x1ed   :  { %710 = dma.done.wait [#allocation5], 512  }
 0x1ee   :  { %711 = vsyncadd [#allocation5], 4294966784 }
 0x1ef   :  { %553 = vsyncpa [#allocation4], 1 }
 0x1f0   :  { %554 = vsyncpa [#allocation7], 1 }
 0x1f1   :  { %555 = vsyncpa [#allocation5], 1 }

</bundles_post_ra>
